<compile_context>
chip_gen: v5e
topology: v5e:2x2
jax: 0.10.0
libtpu: 0.0.40
codegen_flags: <defaults>
</compile_context>

<pallas_src>
import math
import functools

import jax
import jax.numpy as jnp
from jax.experimental import pallas as pl
from jax.experimental.pallas import tpu as pltpu

# ---------------- synthetic config (stand-in for l3cube-pune/tamil-bert) ----
# TODO(synk): real tamil-bert: vocab / final_fc in_features = 197285,
# hidden=768, 12 layers, 12 heads, intermediate=3072; scaled down (but kept
# 128-lane aligned) so the script stays small.
VOCAB = 256
HIDDEN = 128
N_HEADS = 4
HEAD_DIM = HIDDEN // N_HEADS
N_LAYERS = 2
INTERMEDIATE = 512
MAX_POS = 16
NUM_CLASSES = 7
LN_EPS = 1e-12

# tile defaults; at the toy sizes used here they degenerate to full dims.
TM, TN, TK = 256, 512, 512
VMEM_LIMIT = 32 * 1024 * 1024          # safe on v7x; raise on v5e/v6e if needed


def _tile(dim, desired, aligns=(256, 128)):
    """Largest tile <= desired that divides dim and is a multiple of one of
    `aligns` (earlier entries preferred); otherwise the full dim."""
    if dim <= desired:
        return dim
    for align in aligns:
        t = (desired // align) * align
        while t >= align:
            if dim % t == 0:
                return t
            t -= align
    return dim


def _row_tile(m):
    # 256-aligned preferred, 16-aligned (bf16 sublane pack) fallback.
    return _tile(m, TM, aligns=(256, 16, 8))


def _gelu(y):
    # exact (erf) GELU, matching HF BERT hidden_act="gelu"
    return 0.5 * y * (1.0 + jax.lax.erf(y * (1.0 / math.sqrt(2.0))))


def _layernorm_f32(y, g, b):
    mu = jnp.mean(y, axis=-1, keepdims=True)
    var = jnp.mean(jnp.square(y - mu), axis=-1, keepdims=True)
    return (y - mu) * jax.lax.rsqrt(var + LN_EPS) * g + b


# ----------------------------- Pallas kernels ------------------------------
def _dense_kernel(x_ref, w_ref, b_ref, o_ref, acc_ref):
    """Tiled matmul + bias. Grid = (M/tm, N/tn, K/tk)."""
    k = pl.program_id(2)

    @pl.when(k == 0)
    def _():
        acc_ref[...] = jnp.zeros_like(acc_ref)

    acc_ref[...] += jnp.dot(x_ref[...], w_ref[...],
                            preferred_element_type=jnp.float32)

    @pl.when(k == pl.num_programs(2) - 1)
    def _():
        o_ref[...] = (acc_ref[...] + b_ref[...].astype(jnp.float32)).astype(o_ref.dtype)


def _dense_res_ln_kernel(x_ref, w_ref, b_ref, res_ref, g_ref, lb_ref, o_ref, acc_ref):
    """Matmul + bias + residual + LayerNorm epilogue. Grid = (M/tm, K/tk)."""
    k = pl.program_id(1)

    @pl.when(k == 0)
    def _():
        acc_ref[...] = jnp.zeros_like(acc_ref)

    acc_ref[...] += jnp.dot(x_ref[...], w_ref[...],
                            preferred_element_type=jnp.float32)

    @pl.when(k == pl.num_programs(1) - 1)
    def _():
        y = acc_ref[...] + b_ref[...].astype(jnp.float32) + res_ref[...].astype(jnp.float32)
        y = _layernorm_f32(y, g_ref[...].astype(jnp.float32),
                           lb_ref[...].astype(jnp.float32))
        o_ref[...] = y.astype(o_ref.dtype)


def _ffn_kernel(x_ref, wi_ref, bi_ref, wf_ref, bf_ref, g_ref, lb_ref, o_ref):
    """Fused FFN: x@wi+bi -> GELU -> @wf+bf -> +x -> LayerNorm.

    Grid = (M/tm,); the (tm, I) GELU intermediate stays in VMEM/vregs and is
    never written to HBM.
    """
    x = x_ref[...]
    inter = jnp.dot(x, wi_ref[...], preferred_element_type=jnp.float32)
    inter = _gelu(inter + bi_ref[...].astype(jnp.float32))
    y = jnp.dot(inter.astype(wf_ref.dtype), wf_ref[...],
                preferred_element_type=jnp.float32)
    y = y + bf_ref[...].astype(jnp.float32) + x.astype(jnp.float32)
    y = _layernorm_f32(y, g_ref[...].astype(jnp.float32),
                       lb_ref[...].astype(jnp.float32))
    o_ref[...] = y.astype(o_ref.dtype)


def _ln_kernel(x_ref, g_ref, b_ref, o_ref):
    y = _layernorm_f32(x_ref[...].astype(jnp.float32),
                       g_ref[...].astype(jnp.float32),
                       b_ref[...].astype(jnp.float32))
    o_ref[...] = y.astype(o_ref.dtype)


def _attn_kernel(q_ref, k_ref, v_ref, m_ref, o_ref):
    """One (batch, head) pair per grid step; head-major layout, no lane slices."""
    q = q_ref[0, 0]                    # (S, d) bf16, already scaled by 1/sqrt(d)
    k = k_ref[0, 0]
    v = v_ref[0, 0]
    m = m_ref[0]                       # (1, S) additive mask, f32
    s = jax.lax.dot_general(q, k, (((1,), (1,)), ((), ())),
                            preferred_element_type=jnp.float32)
    s = s + m
    s = s - jnp.max(s, axis=-1, keepdims=True)
    p = jnp.exp(s)
    # approx reciprocal is fine for inference; not bit-exact vs. exact softmax.
    p = p * pl.reciprocal(jnp.sum(p, axis=-1, keepdims=True), approx=True)
    o_ref[0, 0] = jnp.dot(p.astype(v.dtype), v,
                          preferred_element_type=jnp.float32).astype(o_ref.dtype)


def _mlm_head_kernel(x_ref, w_ref, b_ref, g_ref, lb_ref, we_ref, be_ref, o_ref):
    """Fused MLM transform (dense+GELU+LN) + mean-over-seq + folded head.

    Grid = (B,). Exploits mean(final_fc(decoder(t)), dim=1) ==
    (mean_t @ (dec_w @ fc_w)) + (dec_b @ fc_w + fc_b); neither the transformed
    (B,S,H) tensor nor the (B,S,VOCAB) logits tensor is ever materialized.
    Head math kept in f32.
    """
    y = jnp.dot(x_ref[...], w_ref[...], preferred_element_type=jnp.float32)
    y = _gelu(y + b_ref[...].astype(jnp.float32))
    t = _layernorm_f32(y, g_ref[...].astype(jnp.float32),
                       lb_ref[...].astype(jnp.float32))          # (S, H) f32
    mean_t = jnp.mean(t, axis=0, keepdims=True)                  # (1, H)
    o_ref[0] = jnp.dot(mean_t, we_ref[...],
                       preferred_element_type=jnp.float32) + be_ref[...]


# ------------------------------ kernel wrappers -----------------------------
def dense(x, w, b, out_dtype=jnp.bfloat16):
    M, K = x.shape
    N = w.shape[1]
    tm, tn, tk = _row_tile(M), _tile(N, TN), _tile(K, TK)
    return pl.pallas_call(
        _dense_kernel,
        out_shape=jax.ShapeDtypeStruct((M, N), out_dtype),
        grid=(M // tm, N // tn, K // tk),
        in_specs=[pl.BlockSpec((tm, tk), lambda i, j, k: (i, k)),
                  pl.BlockSpec((tk, tn), lambda i, j, k: (k, j)),
                  pl.BlockSpec((1, tn), lambda i, j, k: (0, j))],
        out_specs=pl.BlockSpec((tm, tn), lambda i, j, k: (i, j)),
        scratch_shapes=[pltpu.VMEM((tm, tn), jnp.float32)],
        compiler_params=pltpu.CompilerParams(
            dimension_semantics=("parallel", "parallel", "arbitrary"),
            vmem_limit_bytes=VMEM_LIMIT),
    )(x, w, b.reshape(1, N))


def dense_res_ln(x, w, b, res, g, lb, out_dtype=jnp.bfloat16):
    M, K = x.shape
    N = w.shape[1]
    tm, tk = _row_tile(M), _tile(K, TK)
    return pl.pallas_call(
        _dense_res_ln_kernel,
        out_shape=jax.ShapeDtypeStruct((M, N), out_dtype),
        grid=(M // tm, K // tk),
        in_specs=[pl.BlockSpec((tm, tk), lambda i, k: (i, k)),
                  pl.BlockSpec((tk, N), lambda i, k: (k, 0)),
                  pl.BlockSpec((1, N), lambda i, k: (0, 0)),
                  pl.BlockSpec((tm, N), lambda i, k: (i, 0)),
                  pl.BlockSpec((1, N), lambda i, k: (0, 0)),
                  pl.BlockSpec((1, N), lambda i, k: (0, 0))],
        out_specs=pl.BlockSpec((tm, N), lambda i, k: (i, 0)),
        scratch_shapes=[pltpu.VMEM((tm, N), jnp.float32)],
        compiler_params=pltpu.CompilerParams(
            dimension_semantics=("parallel", "arbitrary"),
            vmem_limit_bytes=VMEM_LIMIT),
    )(x, w, b.reshape(1, N), res, g.reshape(1, N), lb.reshape(1, N))


def ffn(x, wi, bi, wf, bf, g, lb, out_dtype=jnp.bfloat16):
    M, H = x.shape
    I = wi.shape[1]
    tm = _row_tile(M)
    return pl.pallas_call(
        _ffn_kernel,
        out_shape=jax.ShapeDtypeStruct((M, H), out_dtype),
        grid=(M // tm,),
        in_specs=[pl.BlockSpec((tm, H), lambda i: (i, 0)),
                  pl.BlockSpec((H, I), lambda i: (0, 0)),
                  pl.BlockSpec((1, I), lambda i: (0, 0)),
                  pl.BlockSpec((I, H), lambda i: (0, 0)),
                  pl.BlockSpec((1, H), lambda i: (0, 0)),
                  pl.BlockSpec((1, H), lambda i: (0, 0)),
                  pl.BlockSpec((1, H), lambda i: (0, 0))],
        out_specs=pl.BlockSpec((tm, H), lambda i: (i, 0)),
        compiler_params=pltpu.CompilerParams(
            dimension_semantics=("parallel",), vmem_limit_bytes=VMEM_LIMIT),
    )(x, wi, bi.reshape(1, I), wf, bf.reshape(1, H),
      g.reshape(1, H), lb.reshape(1, H))


def layernorm(x, g, b, out_dtype=jnp.bfloat16):
    M, N = x.shape
    tm = _row_tile(M)
    return pl.pallas_call(
        _ln_kernel,
        out_shape=jax.ShapeDtypeStruct((M, N), out_dtype),
        grid=(M // tm,),
        in_specs=[pl.BlockSpec((tm, N), lambda i: (i, 0)),
                  pl.BlockSpec((1, N), lambda i: (0, 0)),
                  pl.BlockSpec((1, N), lambda i: (0, 0))],
        out_specs=pl.BlockSpec((tm, N), lambda i: (i, 0)),
        compiler_params=pltpu.CompilerParams(
            dimension_semantics=("parallel",), vmem_limit_bytes=VMEM_LIMIT),
    )(x, g.reshape(1, N), b.reshape(1, N))


def attention(q, k, v, add_mask):
    # q, k, v: (B, n_heads, S, head_dim) head-major (wrapper-side layout plumbing);
    # grid over (batch, head) for pipeline depth / megacore balance.
    B, NH, S, D = q.shape
    spec = pl.BlockSpec((1, 1, S, D), lambda b, h: (b, h, 0, 0))
    m_spec = pl.BlockSpec((1, 1, S), lambda b, h: (b, 0, 0))
    return pl.pallas_call(
        _attn_kernel,
        out_shape=jax.ShapeDtypeStruct((B, NH, S, D), q.dtype),
        grid=(B, NH),
        in_specs=[spec, spec, spec, m_spec],
        out_specs=spec,
        compiler_params=pltpu.CompilerParams(
            dimension_semantics=("parallel", "parallel"),
            vmem_limit_bytes=VMEM_LIMIT),
    )(q, k, v, add_mask)
    # TODO(synk): tile K/V along S (flash-style online softmax) once S grows.


def mlm_head(x, w, b, g, lb, w_eff, b_eff, batch, seq):
    # x: (B*S, H) -> (B, C) via fused transform + mean + folded decoder/fc head.
    H = x.shape[1]
    C = w_eff.shape[1]
    out = pl.pallas_call(
        _mlm_head_kernel,
        out_shape=jax.ShapeDtypeStruct((batch, 1, C), jnp.float32),
        grid=(batch,),
        in_specs=[pl.BlockSpec((seq, H), lambda bix: (bix, 0)),
                  pl.BlockSpec((H, H), lambda bix: (0, 0)),
                  pl.BlockSpec((1, H), lambda bix: (0, 0)),
                  pl.BlockSpec((1, H), lambda bix: (0, 0)),
                  pl.BlockSpec((1, H), lambda bix: (0, 0)),
                  pl.BlockSpec((H, C), lambda bix: (0, 0)),
                  pl.BlockSpec((1, C), lambda bix: (0, 0))],
        out_specs=pl.BlockSpec((1, 1, C), lambda bix: (bix, 0, 0)),
        compiler_params=pltpu.CompilerParams(
            dimension_semantics=("parallel",), vmem_limit_bytes=VMEM_LIMIT),
    )(x, w, b.reshape(1, H), g.reshape(1, H), lb.reshape(1, H),
      w_eff, b_eff.reshape(1, C))
    return out.reshape(batch, C)


# --------------------------- parameter construction ------------------------
def init_params(key):
    keys = iter(jax.random.split(key, 64))
    bf16 = jnp.bfloat16

    def nrm_f32(shape):
        return jax.random.normal(next(keys), shape, jnp.float32) * 0.02

    def nrm(shape):
        return nrm_f32(shape).astype(bf16)

    def ln():
        return jnp.ones((HIDDEN,), bf16), jnp.zeros((HIDDEN,), bf16)

    params = {
        "word_emb": nrm((VOCAB, HIDDEN)),
        "pos_emb": nrm((MAX_POS, HIDDEN)),
        "type_emb": nrm((2, HIDDEN)),
    }
    params["emb_ln_g"], params["emb_ln_b"] = ln()

    scale = 1.0 / math.sqrt(HEAD_DIM)
    layers = []
    for _ in range(N_LAYERS):
        wq, wk, wv = nrm_f32((HIDDEN, HIDDEN)), nrm((HIDDEN, HIDDEN)), nrm((HIDDEN, HIDDEN))
        bq = jnp.zeros((HIDDEN,), jnp.float32)
        bk = jnp.zeros((HIDDEN,), bf16)
        bv = jnp.zeros((HIDDEN,), bf16)
        lp = {
            # fused QKV projection; 1/sqrt(d) folded into the Q slice in f32
            # before the bf16 cast (not bit-exact vs. scaling Q at runtime).
            "w_qkv": jnp.concatenate([(wq * scale).astype(bf16), wk, wv], axis=1),
            "b_qkv": jnp.concatenate([(bq * scale).astype(bf16), bk, bv], axis=0),
            "wo": nrm((HIDDEN, HIDDEN)), "bo": jnp.zeros((HIDDEN,), bf16),
            "wi": nrm((HIDDEN, INTERMEDIATE)), "bi": jnp.zeros((INTERMEDIATE,), bf16),
            "wf": nrm((INTERMEDIATE, HIDDEN)), "bf": jnp.zeros((HIDDEN,), bf16),
        }
        lp["ln1_g"], lp["ln1_b"] = ln()
        lp["ln2_g"], lp["ln2_b"] = ln()
        layers.append(lp)
    params["layers"] = layers

    # MLM head (cls.predictions.transform + decoder) and PSAModel.final_fc.
    params["mlm_w"] = nrm((HIDDEN, HIDDEN))
    params["mlm_b"] = jnp.zeros((HIDDEN,), bf16)
    params["mlm_ln_g"], params["mlm_ln_b"] = ln()

    # decoder(H->VOCAB) -> mean over seq -> final_fc(VOCAB->7) is purely affine,
    # so fold it at init (f32): the 197K-wide vocab logits are never formed.
    dec_w = nrm_f32((HIDDEN, VOCAB))
    dec_b = jnp.zeros((VOCAB,), jnp.float32)
    fc_w = nrm_f32((VOCAB, NUM_CLASSES))
    fc_b = jnp.zeros((NUM_CLASSES,), jnp.float32)
    params["head_w_eff"] = dec_w @ fc_w                      # (H, C) f32
    params["head_b_eff"] = dec_b @ fc_w + fc_b               # (C,)  f32
    return params


# ------------------------------- forward pass ------------------------------
def psa_forward(params, input_ids, mask=None):
    B, S = input_ids.shape

    # embeddings (gather = glue, in plain JAX)
    emb = (params["word_emb"][input_ids]
           + params["pos_emb"][:S][None, :, :]
           + params["type_emb"][0][None, None, :])
    x = layernorm(emb.reshape(B * S, HIDDEN), params["emb_ln_g"], params["emb_ln_b"])

    # attention_mask -> additive bias, same as HF extended attention mask
    if mask is None:
        add_mask = jnp.zeros((B, 1, S), jnp.float32)
    else:
        add_mask = (1.0 - mask.astype(jnp.float32))[:, None, :] * -10000.0

    for lp in params["layers"]:
        qkv = dense(x, lp["w_qkv"], lp["b_qkv"])                    # (B*S, 3H)
        # head-major split (layout plumbing in the wrapper, not compute)
        qkv4 = qkv.reshape(B, S, 3, N_HEADS, HEAD_DIM)
        q = qkv4[:, :, 0].transpose(0, 2, 1, 3)                     # (B, nH, S, d)
        k = qkv4[:, :, 1].transpose(0, 2, 1, 3)
        v = qkv4[:, :, 2].transpose(0, 2, 1, 3)
        ctx = attention(q, k, v, add_mask)                          # (B, nH, S, d)
        ctx = ctx.transpose(0, 2, 1, 3).reshape(B * S, HIDDEN)
        # out-proj + residual + LayerNorm fused into one kernel
        x = dense_res_ln(ctx, lp["wo"], lp["bo"], x, lp["ln1_g"], lp["ln1_b"])
        # fused FFN: intermediate never written to HBM
        x = ffn(x, lp["wi"], lp["bi"], lp["wf"], lp["bf"],
                lp["ln2_g"], lp["ln2_b"])

    # MLM transform + mean-over-seq + folded decoder/final_fc head, one kernel.
    # NOTE: mean is over all S positions (matches torch.mean(logits, dim=1)).
    return mlm_head(x, params["mlm_w"], params["mlm_b"],
                    params["mlm_ln_g"], params["mlm_ln_b"],
                    params["head_w_eff"], params["head_b_eff"], B, S)


# ----------------------------------- main -----------------------------------
if __name__ == "__main__":
    key = jax.random.PRNGKey(0)
    pkey, ikey = jax.random.split(key)
    params = init_params(pkey)

    B, S = 2, 8
    input_ids = jax.random.randint(ikey, (B, S), 0, VOCAB, dtype=jnp.int32)
    attn_mask = jnp.ones((B, S), dtype=jnp.int32)

    out = psa_forward(params, input_ids, attn_mask)
    out = jax.block_until_ready(out)
    assert out.shape == (B, NUM_CLASSES) and out.dtype == jnp.float32
    print("KERNEL_OK")
</pallas_src>

<mosaic_0001>
module attributes {stable_mosaic.version = 11 : i64} {
  func.func @_ln_kernel(%arg0: i32, %arg1: memref<16x128xbf16, #tpu.memory_space<vmem>>, %arg2: memref<1x128xbf16, #tpu.memory_space<vmem>>, %arg3: memref<1x128xbf16, #tpu.memory_space<vmem>>, %arg4: memref<16x128xbf16, #tpu.memory_space<vmem>>) attributes {dimension_semantics = [#tpu.dimension_semantics<parallel>], iteration_bounds = array<i64: 1>, scalar_prefetch = 0 : i64, scratch_operands = 0 : i64, tpu.core_type = #tpu.core_type<tc>, window_params = [{transform_indices = @transform_0, window_bounds = array<i64: 16, 128>}, {pipeline_mode = #tpu.pipeline_mode<synchronous>, transform_indices = @transform_1, window_bounds = array<i64: 1, 128>}, {pipeline_mode = #tpu.pipeline_mode<synchronous>, transform_indices = @transform_2, window_bounds = array<i64: 1, 128>}, {transform_indices = @transform_3, window_bounds = array<i64: 16, 128>}]} {
    %c0 = arith.constant 0 : index
    %c0_0 = arith.constant 0 : index
    %0 = vector.load %arg1[%c0, %c0_0] : memref<16x128xbf16, #tpu.memory_space<vmem>>, vector<16x128xbf16>
    %1 = arith.extf %0 : vector<16x128xbf16> to vector<16x128xf32>
    %c0_1 = arith.constant 0 : index
    %c0_2 = arith.constant 0 : index
    %2 = vector.load %arg2[%c0_1, %c0_2] : memref<1x128xbf16, #tpu.memory_space<vmem>>, vector<1x128xbf16>
    %3 = arith.extf %2 : vector<1x128xbf16> to vector<1x128xf32>
    %c0_3 = arith.constant 0 : index
    %c0_4 = arith.constant 0 : index
    %4 = vector.load %arg3[%c0_3, %c0_4] : memref<1x128xbf16, #tpu.memory_space<vmem>>, vector<1x128xbf16>
    %5 = arith.extf %4 : vector<1x128xbf16> to vector<1x128xf32>
    %cst = arith.constant dense<0.000000e+00> : vector<16xf32>
    %6 = vector.multi_reduction <add>, %1, %cst [1] : vector<16x128xf32> to vector<16xf32>
    %7 = vector.shape_cast %6 : vector<16xf32> to vector<16x1xf32>
    %cst_5 = arith.constant 1.280000e+02 : f32
    %8 = vector.broadcast %cst_5 : f32 to vector<16x1xf32>
    %9 = arith.divf %7, %8 : vector<16x1xf32>
    %10 = vector.broadcast %9 : vector<16x1xf32> to vector<16x128xf32>
    %11 = arith.subf %1, %10 : vector<16x128xf32>
    %12 = arith.mulf %11, %11 : vector<16x128xf32>
    %cst_6 = arith.constant dense<0.000000e+00> : vector<16xf32>
    %13 = vector.multi_reduction <add>, %12, %cst_6 [1] : vector<16x128xf32> to vector<16xf32>
    %14 = vector.shape_cast %13 : vector<16xf32> to vector<16x1xf32>
    %cst_7 = arith.constant 1.280000e+02 : f32
    %15 = vector.broadcast %cst_7 : f32 to vector<16x1xf32>
    %16 = arith.divf %14, %15 : vector<16x1xf32>
    %17 = vector.broadcast %9 : vector<16x1xf32> to vector<16x128xf32>
    %18 = arith.subf %1, %17 : vector<16x128xf32>
    %cst_8 = arith.constant 9.99999996E-13 : f32
    %19 = vector.broadcast %cst_8 : f32 to vector<16x1xf32>
    %20 = arith.addf %16, %19 : vector<16x1xf32>
    %21 = math.rsqrt %20 : vector<16x1xf32>
    %22 = vector.broadcast %21 : vector<16x1xf32> to vector<16x128xf32>
    %23 = arith.mulf %18, %22 : vector<16x128xf32>
    %24 = vector.broadcast %3 : vector<1x128xf32> to vector<16x128xf32>
    %25 = arith.mulf %23, %24 : vector<16x128xf32>
    %26 = vector.broadcast %5 : vector<1x128xf32> to vector<16x128xf32>
    %27 = arith.addf %25, %26 : vector<16x128xf32>
    %28 = arith.truncf %27 : vector<16x128xf32> to vector<16x128xbf16>
    %c0_9 = arith.constant 0 : index
    %c0_10 = arith.constant 0 : index
    %29 = vector.load %arg4[%c0_9, %c0_10] : memref<16x128xbf16, #tpu.memory_space<vmem>>, vector<16x128xbf16>
    tpu.vector_store %arg4[%c0_9, %c0_10], %28 {strides = array<i32>} : memref<16x128xbf16, #tpu.memory_space<vmem>>, vector<16x128xbf16>,
    return
  }
  func.func @transform_0(%arg0: i32) -> (i32, i32) {
    %c0_i32 = arith.constant 0 : i32
    %c0_i32_0 = arith.constant 0 : i32
    return %arg0, %c0_i32 : i32, i32
  }
  func.func @transform_1(%arg0: i32) -> (i32, i32) {
    %c0_i32 = arith.constant 0 : i32
    %c0_i32_0 = arith.constant 0 : i32
    %c0_i32_1 = arith.constant 0 : i32
    return %c0_i32, %c0_i32_0 : i32, i32
  }
  func.func @transform_2(%arg0: i32) -> (i32, i32) {
    %c0_i32 = arith.constant 0 : i32
    %c0_i32_0 = arith.constant 0 : i32
    %c0_i32_1 = arith.constant 0 : i32
    return %c0_i32, %c0_i32_0 : i32, i32
  }
  func.func @transform_3(%arg0: i32) -> (i32, i32) {
    %c0_i32 = arith.constant 0 : i32
    %c0_i32_0 = arith.constant 0 : i32
    return %arg0, %c0_i32 : i32, i32
  }
}

</mosaic_0001>

<bundles_post_ra>
// kernel: tpu_custom_call.1
= control target key start
LH: loop header
LB: loop body
LE: loop exit
PB: predicated region body
PF: predicated region fallthrough
CT: control target
= control target key end

     0   :  { %8 = vsyncpa [#allocation3], 0  ;;  %s273_s0 = inlined_call_operand.hbm [shape: bf16[16,128], index: 0, kind: input, shape index: {}]   ;;  %s274_s1 = inlined_call_operand.hbm [shape: bf16[1,128], index: 1, kind: input, shape index: {}]   ;;  %s275_s2 = inlined_call_operand.vmem [shape: bf16[1,128], index: 2, kind: input, shape index: {}]   ;;  %s276_s3 = inlined_call_operand.hbm [shape: bf16[16,128], index: 3, kind: output, shape index: {}]  }
   0x1   :  { %9 = vsyncpa [#allocation6], 0 }
   0x2   :  { %10 = vsyncpa [#allocation4], 0  ;;  %s15_s14 = sshll.u32 %s273_s0, 4  ;;  %s229_s15 = smov [#allocation2]   ;;  %s16_s14 = int_to_ptr.hbm [resolvable:$true] %s15_s14 }
   0x3   :  { %s17_s16 = sshll.u32 %s229_s15, 4  ;;  %s29_s19 = sshll.u32 %s274_s1, 4  ;;  %s18_s16 = int_to_ptr.vmem [resolvable:$true] %s17_s16  ;;  %s30_s19 = int_to_ptr.hbm [resolvable:$true] %s29_s19 }
   0x4   :  { %s230_s20 = smov 64   ;;  %s231_s21 = smov 4  }
   0x5   :  { %23 = dma.hbm_to_vmem [thread:$0]  %s16_s14, 128, %s18_s16, [#allocation3], %s230_s20, %s230_s20, %s231_s21  }
   0x6   :  { %s232_s22 = smov [#allocation5]  }
   0x7   :  { %s31_s23 = sshll.u32 %s232_s22, 4  ;;  %s32_s23 = int_to_ptr.vmem [resolvable:$true] %s31_s23 }
   0x8   :  { %34 = dma.hbm_to_vmem [thread:$0]  %s30_s19, 16, %s32_s23, [#allocation6]  }
   0x9   :  { %223 = dma.done.wait [#allocation3], 128  }
   0xa   :  { %224 = vsyncadd [#allocation3], 4294967168 }
   0xb   :  { %225 = dma.done.wait [#allocation6], 16  }
   0xc   :  { %226 = vsyncadd [#allocation6], 4294967280  ;;  %v131_v0 = vld [vmem:[#allocation2] sm:$0xff]   ;;  %v233_v3 = vmov 128.0   ;;  %v49_v32 = vld [vmem:[#allocation5] sm:$0x1] }
   0xd   :  { %v132_v1 = vunpack.c.l.bf16 %v131_v0  ;;  %v133_v2 = vunpack.c.h.bf16 %v131_v0  ;;  %145 = vrcp.f32 %v233_v3  ;;  %v50_v34 = vunpack.c.l.bf16 %v49_v32  ;;  %v51_v37 = vld [vmem:[%s275_s2] sm:$0x1]  ;;  %s234_s24 = smov [#allocation7]   ;;  %s116_s28 = sshll.u32 %s276_s3, 4  ;;  %s117_s28 = int_to_ptr.hbm [resolvable:$true] %s116_s28 }
   0xe   :  { %v52_v40 = vunpack.c.l.bf16 %v51_v37  ;;  %s114_s25 = sshll.u32 %s234_s24, 4  ;;  %s115_s25 = int_to_ptr.vmem [resolvable:$true] %s114_s25 }
   0xf   :  { %53 = vadd.xlane.f32.xlu0 %v132_v1  ;;  %v100_v41 = vperm.slane %v50_v34, 0 }
  0x10   :  { %v103_v46 = vperm.slane %v52_v40, 0 }
  0x13   :  { %v146_v4 = vpop.eup %145 }
  0x14   :  { %v58_v5 = vmul.f32 128.0, %v146_v4  ;;  %vm62_vm0 = vweird.f32 %v146_v4 }
  0x16   :  { %v59_v6 = vsub.f32 1.0, %v58_v5 }
  0x17   :  { %55 = vadd.xlane.f32.xlu0 %v133_v2 }
  0x18   :  { %v60_v7 = vmul.f32 %v146_v4, %v59_v6 }
  0x1a   :  { %v61_v8 = vadd.f32 %v146_v4, %v60_v7 }
  0x1c   :  { %v63_v9 = vsel %vm62_vm0, %v146_v4, %v61_v8 }
  0x82   :  { %v54_v10 = vpop.xlane.xlu0 %53 }
  0x83   :  { %v64_v11 = vmul.f32 %v63_v9, %v54_v10 }
  0x85   :  { %v66_v12 = vsub.f32 %v132_v1, %v64_v11 }
  0x87   :  { %v68_v13 = vmul.f32 %v66_v12, %v66_v12 }
  0x89   :  { %70 = vadd.xlane.f32.xlu1 %v68_v13 }
  0x8a   :  { %v56_v14 = vpop.xlane.xlu0 %55 }
  0x8b   :  { %v65_v15 = vmul.f32 %v63_v9, %v56_v14 }
  0x8d   :  { %v67_v16 = vsub.f32 %v133_v2, %v65_v15 }
  0x8f   :  { %v69_v17 = vmul.f32 %v67_v16, %v67_v16 }
  0x91   :  { %72 = vadd.xlane.f32.xlu1 %v69_v17 }
  0xfc   :  { %v71_v18 = vpop.xlane.xlu1 %70 }
  0xfd   :  { %v74_v19 = vmul.f32 %v71_v18, %v63_v9 }
  0xff   :  { %v76_v20 = vadd.f32 1e-12, %v74_v19 }
 0x101   :  { %147 = vrsqrt.f32 %v76_v20  ;;  %vm84_vm2 = vweird.f32 %v76_v20 }
 0x104   :  { %v73_v21 = vpop.xlane.xlu1 %72 }
 0x105   :  { %v75_v22 = vmul.f32 %v73_v21, %v63_v9 }
 0x107   :  { %v148_v23 = vpop.eup %147  ;;  %v77_v24 = vadd.f32 1e-12, %v75_v22 }
 0x108   :  { %v79_v25 = vmul.f32 %v148_v23, %v76_v20  ;;  %vm85_vm1 = vweird.f32 %v148_v23 }
 0x109   :  { %149 = vrsqrt.f32 %v77_v24  ;;  %vm86_vm3 = vmor %vm84_vm2, %vm85_vm1  ;;  %vm94_vm5 = vweird.f32 %v77_v24 }
 0x10a   :  { %v80_v26 = vmul.f32 %v148_v23, %v79_v25 }
 0x10c   :  { %v81_v27 = vmul.f32 0.5, %v80_v26 }
 0x10e   :  { %v82_v28 = vsub.f32 1.5, %v81_v27 }
 0x10f   :  { %v150_v29 = vpop.eup %149 }
 0x110   :  { %v83_v30 = vmul.f32 %v148_v23, %v82_v28  ;;  %v89_v31 = vmul.f32 %v150_v29, %v77_v24  ;;  %vm95_vm4 = vweird.f32 %v150_v29 }
 0x111   :  { %vm96_vm6 = vmor %vm94_vm5, %vm95_vm4 }
 0x112   :  { %v90_v33 = vmul.f32 %v150_v29, %v89_v31  ;;  %v87_v35 = vsel %vm86_vm3, %v148_v23, %v83_v30 }
 0x113   :  { %v98_v39 = vmul.f32 %v87_v35, %v66_v12 }
 0x114   :  { %v91_v36 = vmul.f32 0.5, %v90_v33 }
 0x115   :  { %v101_v45 = vmul.f32 %v100_v41, %v98_v39 }
 0x116   :  { %v92_v38 = vsub.f32 1.5, %v91_v36 }
 0x117   :  { %v104_v48 = vadd.f32 %v103_v46, %v101_v45 }
 0x118   :  { %v93_v42 = vmul.f32 %v150_v29, %v92_v38 }
 0x11a   :  { %v97_v43 = vsel %vm96_vm6, %v150_v29, %v93_v42 }
 0x11b   :  { %v99_v44 = vmul.f32 %v97_v43, %v67_v16 }
 0x11d   :  { %v102_v47 = vmul.f32 %v100_v41, %v99_v44 }
 0x11f   :  { %v105_v49 = vadd.f32 %v103_v46, %v102_v47 }
 0x121   :  { %v137_v50 = vpack.c.bf16 %v105_v49, %v104_v48 }
 0x123   :  { %138 = vst [vmem:[#allocation7] sm:$0xff] %v137_v50  }
 0x124   :  { %122 = dma.vmem_to_hbm [thread:$0]  %s115_s25, 128, %s117_s28, [#allocation4], %s230_s20, %s230_s20, %s231_s21  }
 0x125   :  { %227 = dma.done.wait [#allocation4], 128  }
 0x126   :  { %228 = vsyncadd [#allocation4], 4294967168 }
 0x127   :  { %127 = vsyncpa [#allocation3], 1 }
 0x128   :  { %128 = vsyncpa [#allocation6], 1 }
 0x129   :  { %129 = vsyncpa [#allocation4], 1 }

</bundles_post_ra>
